<compile_context>
chip_gen: v6e
topology: v6e:2x2x1
jax: 0.10.0
libtpu: 0.0.40
codegen_flags: <defaults>
</compile_context>

<pallas_src>
import jax
import jax.numpy as jnp
from jax import lax
from jax.experimental import pallas as pl
from jax.experimental.pallas import tpu as pltpu

EPS = 1e-5


def _residual_block_kernel(x_ref, wdw_ref, bdw_ref, wpw_ref, wsk_ref, cvec_ref,
                           o_ref, dw_ref):
    """Grid = (batch, L tiles).

    x_ref   : (1, Cin, L)   full row of one batch element (fetched once per n)
    wdw_ref : (Cin, K)      depthwise taps
    bdw_ref : (Cin, 1)      depthwise bias
    wpw_ref : (Cout, Cin)   pointwise weights, BN1 pre-folded (bf16/f32)
    wsk_ref : (Cout, Cin)   skip weights, BN_skip pre-folded (bf16/f32)
    cvec_ref: (Cout, 4)     [bpw', s2, h2, bsk'] packed per-channel vectors
    o_ref   : (1, Cout, TL) one lane-dense output tile
    dw_ref  : (Cin, L)      VMEM scratch caching the depthwise result
    """
    L = x_ref.shape[2]
    TL = o_ref.shape[2]
    K = wdw_ref.shape[1]
    half = K // 2
    j = pl.program_id(1)

    # ---- depthwise conv (K taps, stride=1, dilation=1, zero padding) -------
    # Computed once per batch element over the full L and cached in scratch;
    # lane rolls (XLU) replace misaligned +/-1 slices, and the wrapped
    # boundary lanes are masked to reproduce the zero padding.
    @pl.when(j == 0)
    def _():
        x = x_ref[0]                                             # (Cin, L) f32
        lane = lax.broadcasted_iota(jnp.int32, x.shape, 1)
        acc = jnp.zeros_like(x)
        for t in range(K):                                       # static unroll
            s = half - t                                         # -> x[l + t - half]
            xt = x if s == 0 else pltpu.roll(x, shift=s % L, axis=1)
            if s > 0:
                xt = jnp.where(lane < s, 0.0, xt)
            elif s < 0:
                xt = jnp.where(lane >= L + s, 0.0, xt)
            acc = acc + xt * wdw_ref[:, t:t + 1]
        dw_ref[...] = (acc + bdw_ref[...]).astype(dw_ref.dtype)

    # ---- per-L-tile fused 1x1 convs / BN / ReLU / residual ------------------
    off = pl.multiple_of(j * TL, TL)
    dw_t = dw_ref[:, pl.ds(off, TL)]                             # (Cin, TL)
    x_t = x_ref[0, :, pl.ds(off, TL)].astype(wpw_ref.dtype)      # (Cin, TL)

    # pointwise 1x1 conv with BN1 folded into (wpw, bpw')
    out = jnp.dot(wpw_ref[...], dw_t,
                  preferred_element_type=jnp.float32) + cvec_ref[:, 0:1]
    out = jnp.maximum(out, 0.0)                                  # ReLU
    out = out * cvec_ref[:, 1:2] + cvec_ref[:, 2:3]              # BN2

    # skip path: 1x1 conv with BN_skip folded into (wsk, bsk')
    sk = jnp.dot(wsk_ref[...], x_t,
                 preferred_element_type=jnp.float32) + cvec_ref[:, 3:4]

    o_ref[0] = jnp.maximum(out + sk, 0.0).astype(o_ref.dtype)    # add + ReLU


def _bn_affine(gamma, beta, mean, var):
    scale = gamma / jnp.sqrt(var + EPS)
    shift = beta - mean * scale
    return scale, shift


def _pick_l_tile(L):
    if L % 128 != 0:
        return L                 # single full-L block (legal: equals array dim)
    for cand in (512, 256, 128):
        if L % cand == 0:
            return cand
    return L


def residual_block(x_ncl, p, *, matmul_dtype=jnp.bfloat16, l_tile=None):
    """x_ncl: (N, Cin, L) float32, PyTorch NCL layout (kept throughout)."""
    N, Cin, L = x_ncl.shape
    Cout = p["w_pw"].shape[0]
    K = p["w_dw"].shape[2]
    TL = _pick_l_tile(L) if l_tile is None else l_tile
    assert L % TL == 0

    # ---- parameter prep: BN folding + packing (all glue, done once) --------
    s1, h1 = _bn_affine(p["bn1_g"], p["bn1_b"], p["bn1_m"], p["bn1_v"])
    s2, h2 = _bn_affine(p["bn2_g"], p["bn2_b"], p["bn2_m"], p["bn2_v"])
    ssk, hsk = _bn_affine(p["sk_g"], p["sk_b"], p["sk_m"], p["sk_v"])

    wdw = p["w_dw"][:, 0, :]                                     # (Cin, K)
    bdw = p["b_dw"][:, None]                                     # (Cin, 1)
    wpw = (p["w_pw"][:, :, 0] * s1[:, None]).astype(matmul_dtype)   # (Cout, Cin)
    wsk = (p["w_sk"][:, :, 0] * ssk[:, None]).astype(matmul_dtype)  # (Cout, Cin)
    bpw = p["b_pw"] * s1 + h1                                    # BN1 folded
    bsk = p["b_sk"] * ssk + hsk                                  # BN_skip folded
    cvec = jnp.stack([bpw, s2, h2, bsk], axis=1)                 # (Cout, 4)

    const = lambda shape: pl.BlockSpec(shape, lambda n, j: (0, 0))

    return pl.pallas_call(
        _residual_block_kernel,
        out_shape=jax.ShapeDtypeStruct((N, Cout, L), jnp.float32),
        grid=(N, L // TL),
        in_specs=[
            # full (Cin, L) row of one batch element; index_map ignores j so
            # Pallas fetches this block from HBM only once per batch element.
            pl.BlockSpec((1, Cin, L), lambda n, j: (n, 0, 0)),
            const((Cin, K)),           # depthwise weights
            const((Cin, 1)),           # depthwise bias
            const((Cout, Cin)),        # pointwise weights (BN1 folded)
            const((Cout, Cin)),        # skip weights (BN_skip folded)
            const((Cout, 4)),          # packed [bpw', s2, h2, bsk']
        ],
        out_specs=pl.BlockSpec((1, Cout, TL), lambda n, j: (n, 0, j)),
        scratch_shapes=[pltpu.VMEM((Cin, L), matmul_dtype)],     # cached depthwise
        compiler_params=pltpu.CompilerParams(
            dimension_semantics=("parallel", "arbitrary"),
            vmem_limit_bytes=32 * 1024 * 1024),
    )(x_ncl, wdw, bdw, wpw, wsk, cvec)


def reference_forward(x_ncl, p):
    """Pure-JAX mirror of the PyTorch module (eval-mode BN) for checking."""
    Cin = x_ncl.shape[1]
    dn = ("NCH", "OIH", "NCH")

    def bn(y, g, b, m, v):
        return ((y - m[None, :, None]) / jnp.sqrt(v[None, :, None] + EPS)
                * g[None, :, None] + b[None, :, None])

    dw = lax.conv_general_dilated(x_ncl, p["w_dw"], (1,), [(1, 1)],
                                  feature_group_count=Cin,
                                  dimension_numbers=dn) + p["b_dw"][None, :, None]
    pw = lax.conv_general_dilated(dw, p["w_pw"], (1,), [(0, 0)],
                                  dimension_numbers=dn) + p["b_pw"][None, :, None]
    out = bn(pw, p["bn1_g"], p["bn1_b"], p["bn1_m"], p["bn1_v"])
    out = jnp.maximum(out, 0.0)
    out = bn(out, p["bn2_g"], p["bn2_b"], p["bn2_m"], p["bn2_v"])
    sk = lax.conv_general_dilated(x_ncl, p["w_sk"], (1,), [(0, 0)],
                                  dimension_numbers=dn) + p["b_sk"][None, :, None]
    sk = bn(sk, p["sk_g"], p["sk_b"], p["sk_m"], p["sk_v"])
    return jnp.maximum(out + sk, 0.0)


if __name__ == "__main__":
    N, Cin, Cout, L, K = 2, 8, 16, 1024, 3

    keys = jax.random.split(jax.random.PRNGKey(0), 20)
    k = iter(keys)
    nrm = lambda shape, s=0.1: s * jax.random.normal(next(k), shape, jnp.float32)
    pos = lambda shape: jax.random.uniform(next(k), shape, jnp.float32, 0.5, 1.5)

    params = {
        "w_dw": nrm((Cin, 1, K), 0.5),  "b_dw": nrm((Cin,)),
        "w_pw": nrm((Cout, Cin, 1), 0.5), "b_pw": nrm((Cout,)),
        "w_sk": nrm((Cout, Cin, 1), 0.5), "b_sk": nrm((Cout,)),
        "bn1_g": pos((Cout,)), "bn1_b": nrm((Cout,)),
        "bn1_m": nrm((Cout,)), "bn1_v": pos((Cout,)),
        "bn2_g": pos((Cout,)), "bn2_b": nrm((Cout,)),
        "bn2_m": nrm((Cout,)), "bn2_v": pos((Cout,)),
        "sk_g": pos((Cout,)), "sk_b": nrm((Cout,)),
        "sk_m": nrm((Cout,)), "sk_v": pos((Cout,)),
    }

    x = jax.random.normal(jax.random.PRNGKey(0), (N, Cin, L), jnp.float32)

    ref = jax.block_until_ready(reference_forward(x, params))

    # Strict check: f32 MXU path must match the lax.conv reference tightly.
    out_f32 = jax.block_until_ready(
        residual_block(x, params, matmul_dtype=jnp.float32))
    assert out_f32.shape == (N, Cout, L)
    err_f32 = jnp.max(jnp.abs(out_f32 - ref))
    assert jnp.allclose(out_f32, ref, atol=1e-4, rtol=1e-4), \
        f"f32 path max abs err {err_f32}"

    # Fast path: bf16 MXU inputs with f32 accumulation (bf16-level tolerance).
    out_bf16 = jax.block_until_ready(residual_block(x, params))
    err_bf16 = jnp.max(jnp.abs(out_bf16 - ref))
    assert jnp.allclose(out_bf16, ref, atol=1e-1, rtol=1e-1), \
        f"bf16 path max abs err {err_bf16}"

    print("KERNEL_OK")
</pallas_src>

<mosaic_0001>
module attributes {stable_mosaic.version = 11 : i64} {
  func.func @_residual_block_kernel(%arg0: i32, %arg1: i32, %arg2: memref<1x8x1024xf32, #tpu.memory_space<vmem>>, %arg3: memref<8x3xf32, #tpu.memory_space<vmem>>, %arg4: memref<8x1xf32, #tpu.memory_space<vmem>>, %arg5: memref<16x8xf32, #tpu.memory_space<vmem>>, %arg6: memref<16x8xf32, #tpu.memory_space<vmem>>, %arg7: memref<16x4xf32, #tpu.memory_space<vmem>>, %arg8: memref<1x16x512xf32, #tpu.memory_space<vmem>>, %arg9: memref<8x1024xf32, #tpu.memory_space<vmem>>) attributes {dimension_semantics = [#tpu.dimension_semantics<parallel>, #tpu.dimension_semantics<arbitrary>], iteration_bounds = array<i64: 2, 2>, scalar_prefetch = 0 : i64, scratch_operands = 1 : i64, tpu.core_type = #tpu.core_type<tc>, window_params = [{transform_indices = @transform_0, window_bounds = array<i64: 1, 8, 1024>}, {pipeline_mode = #tpu.pipeline_mode<synchronous>, transform_indices = @transform_1, window_bounds = array<i64: 8, 3>}, {pipeline_mode = #tpu.pipeline_mode<synchronous>, transform_indices = @transform_2, window_bounds = array<i64: 8, 1>}, {pipeline_mode = #tpu.pipeline_mode<synchronous>, transform_indices = @transform_3, window_bounds = array<i64: 16, 8>}, {pipeline_mode = #tpu.pipeline_mode<synchronous>, transform_indices = @transform_4, window_bounds = array<i64: 16, 8>}, {pipeline_mode = #tpu.pipeline_mode<synchronous>, transform_indices = @transform_5, window_bounds = array<i64: 16, 4>}, {transform_indices = @transform_6, window_bounds = array<i64: 1, 16, 512>}]} {
    %c0_i32 = arith.constant 0 : i32
    %0 = arith.cmpi eq, %arg1, %c0_i32 : i32
    %1 = arith.extui %0 : i1 to i32
    %c0_i32_0 = arith.constant 0 : i32
    %2 = arith.cmpi ne, %1, %c0_i32_0 : i32
    scf.if %2 {
      %c0_18 = arith.constant 0 : index
      %c0_19 = arith.constant 0 : index
      %c0_20 = arith.constant 0 : index
      %34 = vector.load %arg2[%c0_18, %c0_19, %c0_20] : memref<1x8x1024xf32, #tpu.memory_space<vmem>>, vector<1x8x1024xf32>
      %35 = vector.shape_cast %34 : vector<1x8x1024xf32> to vector<8x1024xf32>
      %36 = tpu.iota {dimensions = array<i32: 1>} : vector<8x1024xi32>
      %cst_21 = arith.constant 0.000000e+00 : f32
      %37 = vector.broadcast %cst_21 : f32 to vector<8x1024xf32>
      %c1_i32 = arith.constant 1 : i32
      %38 = tpu.dynamic_rotate %35 by %c1_i32 dim 1 : vector<8x1024xf32>, i32 -> vector<8x1024xf32>
      %c1_i32_22 = arith.constant 1 : i32
      %39 = vector.broadcast %c1_i32_22 : i32 to vector<8x1024xi32>
      %40 = arith.cmpi slt, %36, %39 : vector<8x1024xi32>
      %cst_23 = arith.constant 0.000000e+00 : f32
      %41 = vector.broadcast %cst_23 : f32 to vector<8x1024xf32>
      %42 = arith.select %40, %41, %38 : vector<8x1024xi1>, vector<8x1024xf32>
      %c0_24 = arith.constant 0 : index
      %c0_25 = arith.constant 0 : index
      %43 = vector.load %arg3[%c0_24, %c0_25] : memref<8x3xf32, #tpu.memory_space<vmem>>, vector<8x1xf32>
      %44 = vector.broadcast %43 : vector<8x1xf32> to vector<8x1024xf32>
      %45 = arith.mulf %42, %44 : vector<8x1024xf32>
      %46 = arith.addf %37, %45 : vector<8x1024xf32>
      %c0_26 = arith.constant 0 : index
      %c1_27 = arith.constant 1 : index
      %47 = vector.load %arg3[%c0_26, %c1_27] : memref<8x3xf32, #tpu.memory_space<vmem>>, vector<8x1xf32>
      %48 = vector.broadcast %47 : vector<8x1xf32> to vector<8x1024xf32>
      %49 = arith.mulf %35, %48 : vector<8x1024xf32>
      %50 = arith.addf %46, %49 : vector<8x1024xf32>
      %c1023_i32 = arith.constant 1023 : i32
      %51 = tpu.dynamic_rotate %35 by %c1023_i32 dim 1 : vector<8x1024xf32>, i32 -> vector<8x1024xf32>
      %c1023_i32_28 = arith.constant 1023 : i32
      %52 = vector.broadcast %c1023_i32_28 : i32 to vector<8x1024xi32>
      %53 = arith.cmpi sge, %36, %52 : vector<8x1024xi32>
      %cst_29 = arith.constant 0.000000e+00 : f32
      %54 = vector.broadcast %cst_29 : f32 to vector<8x1024xf32>
      %55 = arith.select %53, %54, %51 : vector<8x1024xi1>, vector<8x1024xf32>
      %c0_30 = arith.constant 0 : index
      %c2_31 = arith.constant 2 : index
      %56 = vector.load %arg3[%c0_30, %c2_31] : memref<8x3xf32, #tpu.memory_space<vmem>>, vector<8x1xf32>
      %57 = vector.broadcast %56 : vector<8x1xf32> to vector<8x1024xf32>
      %58 = arith.mulf %55, %57 : vector<8x1024xf32>
      %59 = arith.addf %50, %58 : vector<8x1024xf32>
      %c0_32 = arith.constant 0 : index
      %c0_33 = arith.constant 0 : index
      %60 = vector.load %arg4[%c0_32, %c0_33] : memref<8x1xf32, #tpu.memory_space<vmem>>, vector<8x1xf32>
      %61 = vector.broadcast %60 : vector<8x1xf32> to vector<8x1024xf32>
      %62 = arith.addf %59, %61 : vector<8x1024xf32>
      %c0_34 = arith.constant 0 : index
      %c0_35 = arith.constant 0 : index
      %63 = vector.load %arg9[%c0_34, %c0_35] : memref<8x1024xf32, #tpu.memory_space<vmem>>, vector<8x1024xf32>
      tpu.vector_store %arg9[%c0_34, %c0_35], %62 {strides = array<i32>} : memref<8x1024xf32, #tpu.memory_space<vmem>>, vector<8x1024xf32>,
    } else {
    }
    %c512_i32 = arith.constant 512 : i32
    %3 = arith.muli %arg1, %c512_i32 : i32
    %4 = tpu.assume_multiple %3, 512 : i32
    %c0 = arith.constant 0 : index
    %5 = arith.index_cast %4 : i32 to index
    %6 = vector.load %arg9[%c0, %5] : memref<8x1024xf32, #tpu.memory_space<vmem>>, vector<8x512xf32>
    %c0_1 = arith.constant 0 : index
    %c0_2 = arith.constant 0 : index
    %7 = arith.index_cast %4 : i32 to index
    %8 = vector.load %arg2[%c0_1, %c0_2, %7] : memref<1x8x1024xf32, #tpu.memory_space<vmem>>, vector<1x8x512xf32>
    %9 = vector.shape_cast %8 : vector<1x8x512xf32> to vector<8x512xf32>
    %c0_3 = arith.constant 0 : index
    %c0_4 = arith.constant 0 : index
    %10 = vector.load %arg5[%c0_3, %c0_4] : memref<16x8xf32, #tpu.memory_space<vmem>>, vector<16x8xf32>
    %cst = arith.constant dense<0.000000e+00> : vector<16x512xf32>
    %11 = tpu.matmul %10, %6, %cst {dimension_numbers = #tpu.dot_dimension_numbers<[1], [0], [0], [1], [0, 0, 1, 1], [], []>} : vector<16x8xf32>, vector<8x512xf32>, vector<16x512xf32> -> vector<16x512xf32>
    %c0_5 = arith.constant 0 : index
    %c0_6 = arith.constant 0 : index
    %12 = vector.load %arg7[%c0_5, %c0_6] : memref<16x4xf32, #tpu.memory_space<vmem>>, vector<16x1xf32>
    %13 = vector.broadcast %12 : vector<16x1xf32> to vector<16x512xf32>
    %14 = arith.addf %11, %13 : vector<16x512xf32>
    %cst_7 = arith.constant 0.000000e+00 : f32
    %15 = vector.broadcast %cst_7 : f32 to vector<16x512xf32>
    %16 = arith.maximumf %14, %15 : vector<16x512xf32>
    %c0_8 = arith.constant 0 : index
    %c1 = arith.constant 1 : index
    %17 = vector.load %arg7[%c0_8, %c1] : memref<16x4xf32, #tpu.memory_space<vmem>>, vector<16x1xf32>
    %18 = vector.broadcast %17 : vector<16x1xf32> to vector<16x512xf32>
    %19 = arith.mulf %16, %18 : vector<16x512xf32>
    %c0_9 = arith.constant 0 : index
    %c2 = arith.constant 2 : index
    %20 = vector.load %arg7[%c0_9, %c2] : memref<16x4xf32, #tpu.memory_space<vmem>>, vector<16x1xf32>
    %21 = vector.broadcast %20 : vector<16x1xf32> to vector<16x512xf32>
    %22 = arith.addf %19, %21 : vector<16x512xf32>
    %c0_10 = arith.constant 0 : index
    %c0_11 = arith.constant 0 : index
    %23 = vector.load %arg6[%c0_10, %c0_11] : memref<16x8xf32, #tpu.memory_space<vmem>>, vector<16x8xf32>
    %cst_12 = arith.constant dense<0.000000e+00> : vector<16x512xf32>
    %24 = tpu.matmul %23, %9, %cst_12 {dimension_numbers = #tpu.dot_dimension_numbers<[1], [0], [0], [1], [0, 0, 1, 1], [], []>} : vector<16x8xf32>, vector<8x512xf32>, vector<16x512xf32> -> vector<16x512xf32>
    %c0_13 = arith.constant 0 : index
    %c3 = arith.constant 3 : index
    %25 = vector.load %arg7[%c0_13, %c3] : memref<16x4xf32, #tpu.memory_space<vmem>>, vector<16x1xf32>
    %26 = vector.broadcast %25 : vector<16x1xf32> to vector<16x512xf32>
    %27 = arith.addf %24, %26 : vector<16x512xf32>
    %28 = arith.addf %22, %27 : vector<16x512xf32>
    %cst_14 = arith.constant 0.000000e+00 : f32
    %29 = vector.broadcast %cst_14 : f32 to vector<16x512xf32>
    %30 = arith.maximumf %28, %29 : vector<16x512xf32>
    %c0_15 = arith.constant 0 : index
    %c0_16 = arith.constant 0 : index
    %c0_17 = arith.constant 0 : index
    %31 = vector.load %arg8[%c0_15, %c0_16, %c0_17] : memref<1x16x512xf32, #tpu.memory_space<vmem>>, vector<1x16x512xf32>
    %32 = vector.shape_cast %31 : vector<1x16x512xf32> to vector<16x512xf32>
    %33 = vector.shape_cast %30 : vector<16x512xf32> to vector<1x16x512xf32>
    tpu.vector_store %arg8[%c0_15, %c0_16, %c0_17], %33 {strides = array<i32>} : memref<1x16x512xf32, #tpu.memory_space<vmem>>, vector<1x16x512xf32>,
    return
  }
  func.func @transform_0(%arg0: i32, %arg1: i32) -> (i32, i32, i32) {
    %c0_i32 = arith.constant 0 : i32
    %c0_i32_0 = arith.constant 0 : i32
    %c0_i32_1 = arith.constant 0 : i32
    return %arg0, %c0_i32, %c0_i32_0 : i32, i32, i32
  }
  func.func @transform_1(%arg0: i32, %arg1: i32) -> (i32, i32) {
    %c0_i32 = arith.constant 0 : i32
    %c0_i32_0 = arith.constant 0 : i32
    %c0_i32_1 = arith.constant 0 : i32
    return %c0_i32, %c0_i32_0 : i32, i32
  }
  func.func @transform_2(%arg0: i32, %arg1: i32) -> (i32, i32) {
    %c0_i32 = arith.constant 0 : i32
    %c0_i32_0 = arith.constant 0 : i32
    %c0_i32_1 = arith.constant 0 : i32
    return %c0_i32, %c0_i32_0 : i32, i32
  }
  func.func @transform_3(%arg0: i32, %arg1: i32) -> (i32, i32) {
    %c0_i32 = arith.constant 0 : i32
    %c0_i32_0 = arith.constant 0 : i32
    %c0_i32_1 = arith.constant 0 : i32
    return %c0_i32, %c0_i32_0 : i32, i32
  }
  func.func @transform_4(%arg0: i32, %arg1: i32) -> (i32, i32) {
    %c0_i32 = arith.constant 0 : i32
    %c0_i32_0 = arith.constant 0 : i32
    %c0_i32_1 = arith.constant 0 : i32
    return %c0_i32, %c0_i32_0 : i32, i32
  }
  func.func @transform_5(%arg0: i32, %arg1: i32) -> (i32, i32) {
    %c0_i32 = arith.constant 0 : i32
    %c0_i32_0 = arith.constant 0 : i32
    %c0_i32_1 = arith.constant 0 : i32
    return %c0_i32, %c0_i32_0 : i32, i32
  }
  func.func @transform_6(%arg0: i32, %arg1: i32) -> (i32, i32, i32) {
    %c0_i32 = arith.constant 0 : i32
    %c0_i32_0 = arith.constant 0 : i32
    return %arg0, %c0_i32, %arg1 : i32, i32, i32
  }
}

</mosaic_0001>

<bundles_post_ra>
// kernel: tpu_custom_call.1
= control target key start
LH: loop header
LB: loop body
LE: loop exit
PB: predicated region body
PF: predicated region fallthrough
CT: control target
= control target key end

     0   :  { %s1672_s0 = inlined_call_operand.hbm [shape: f32[2,8,1024], index: 0, kind: input, shape index: {}]   ;;  %s1673_s1 = inlined_call_operand.vmem [shape: f32[8,3], index: 1, kind: input, shape index: {}]   ;;  %s1674_s2 = inlined_call_operand.vmem [shape: f32[8,1], index: 2, kind: input, shape index: {}]   ;;  %s1675_s3 = inlined_call_operand.vmem [shape: f32[16,8], index: 3, kind: input, shape index: {}]   ;;  %s1676_s4 = inlined_call_operand.vmem [shape: f32[16,8], index: 4, kind: input, shape index: {}]   ;;  %s1677_s5 = inlined_call_operand.vmem [shape: f32[16,4], index: 5, kind: input, shape index: {}]   ;;  %s1678_s6 = inlined_call_operand.hbm [shape: f32[2,16,1024], index: 6, kind: output, shape index: {}]  }
   0x1   :  { %1685 = sst [smem:[#allocation13_spill]] %s1678_s6 }
   0x2   :  { %11 = vsyncpa [#allocation4], 0 }
   0x3   :  { %13 = vsyncpa [#allocation4 + $0x1], 0 }
   0x4   :  { %14 = vsyncpa [#allocation5], 0 }
   0x5   :  { %16 = vsyncpa [#allocation5 + $0x1], 0  ;;  %s1353_s21 = smov 0   ;;  %s1355_s22 = smov 0  }
   0x6   :  { %s1357_s23 = smov 0   ;;  %s1359_s24 = smov 0  }
   0x7   :  { %s1361_s25 = smov 0   ;;  %s1363_s26 = smov 0  }
   0x8   :  { %s1365_s27 = smov 0   ;;  %s1367_s28 = smov 0  }
   0x9   :  { %s1369_s29 = smov 0   ;;  %s1371_s30 = smov 0  }
   0xa   :  { %s1373_s7 = smov 0  }
   0xb LB: > { %1686 = sst [smem:[#allocation9_spill]] %s1293_s29  ;;  %s1000_s8 = sadd.s32 4294967295, %s1301_s7   ;;  %s1301_s7 = sphi %s1373_s7, %s22_s7   ;;  %s1297_s30 = sphi %s1371_s30, %s1708_s30   ;;  %s1293_s29 = sphi %s1369_s29, %s1699_s29   ;;  %s1289_s28 = sphi %s1367_s28, %s1707_s28   ;;  %s1285_s27 = sphi %s1365_s27, %s1698_s27   ;;  %s1281_s26 = sphi %s1363_s26, %s1706_s26   ;;  %s1277_s25 = sphi %s1361_s25, %s1705_s25   ;;  %s1273_s24 = sphi %s1359_s24, %s1704_s24   ;;  %s1269_s23 = sphi %s1357_s23, %s1703_s23   ;;  %s1265_s22 = sphi %s1355_s22, %s1702_s22   ;;  %s1261_s21 = sphi %s1353_s21, %s1701_s21  }
   0xc   : > { %s1001_s9 = sadd.s32 4294967294, %s1301_s7   ;;  %s31_s10 = sadd.s32 1, %s1293_s29 }
   0xd   : > { %s34_s11 = sadd.s32 1, %s1297_s30  ;;  %p32_p0 = scmp.ge.s32.totalorder %s31_s10, 2 }
   0xe   : > { %s41_s12 = sadd.s32 1, %s1281_s26  ;;  %p48_p1 = scmp.ne.s32.totalorder %s1281_s26, %s1277_s25 }
   0xf   : > { %p49_p2 = scmp.eq.s32.totalorder %s1301_s7, 0  ;;  %s1710_s10 = smov (%p32_p0, %s31_s10), 0 }
  0x10   : > { %1687 = sst [smem:[#allocation10_spill]] %s1710_s10  ;;  %s1712_s11 = smov (!%p32_p0, %s34_s11), %s1297_s30 }
  0x11   : > { %p1417_p3 = por %p49_p2, %p48_p1  ;;  %p54_p4 = scmp.ne.s32.totalorder %s1277_s25, %s1273_s24 }
  0x12   : > { %p36_p5 = scmp.ge.s32.totalorder %s1712_s11, 2  ;;  %p55_p6 = scmp.eq.s32.totalorder %s1000_s8, 0 }
  0x13   : > { %s170_s14 = ssub.s32 %s1293_s29, %s1710_s10  ;;  %s174_s15 = sadd.s32 1, %s1269_s23 }
  0x14   : > { %s1714_s11 = smov (%p36_p5, %s1712_s11), 0  ;;  %p1427_p7 = por %p55_p6, %p54_p4 }
  0x15   : > { %1689 = sst [smem:[#allocation11_spill]] %s1714_s11  ;;  %p184_p8 = scmp.ne.s32.totalorder %s1269_s23, %s1265_s22 }
  0x16   : > { %s38_s17 = ssub.s32 %s1297_s30, %s1714_s11  ;;  %p185_p9 = scmp.eq.s32.totalorder %s1000_s8, 3 }
  0x17   : > { %p39_p10 = scmp.eq.s32.totalorder %s38_s17, 0  ;;  %s171_s18 = sor.u32 %s170_s14, %s38_s17 }
  0x18   : > { %p172_p11 = scmp.eq.s32.totalorder %s171_s18, 0  ;;  %p1435_p12 = por %p185_p9, %p184_p8 }
  0x19   : > { %s1440_s20 = scalar_select %p39_p10, %s1281_s26, %s41_s12  }
  0x1a   : > { %s1691_s19 = scalar_select %p1435_p12, 1, 0 }
  0x1b   : > { %s1443_s24 = scalar_select %p172_p11, %s1269_s23, %s174_s15  }
  0x1c   : > { %1692 = sst [smem:[#allocation12_spill]] %s1691_s19  ;;  %p190_p13 = scmp.ne.s32.totalorder %s1265_s22, %s1261_s21 }
  0x1d   : > { %p191_p0 = scmp.eq.s32.totalorder %s1001_s9, 3  ;;  %p1041_p1 = scmp.lt.s32.totalorder %s1301_s7, 4 }
  0x1e   : > { %s226_s8 = sand.u32 1, %s1281_s26   ;;  %s1028_s17 = sshll.u32 %s1297_s30, 10 }
  0x1f   : > { %p1448_p2 = por %p191_p0, %p190_p13  ;;  %s1004_s14 = sshll.u32 %s226_s8, 6 }
  0x20   : > { %s236_s29 = scalar_lea.hbm %s1672_s0, %s1028_s17  ;;  %s230_s6 = scalar_lea.vmem [#allocation3], %s1004_s14 }
  0x21   : > { %s1693_s11 = scalar_select %p1448_p2, 1, 0 }
  0x22   : > { %s238_s19 = sshll.u32 %s230_s6, 4  ;;  %p1459_p4 = pnand %p1041_p1, %p1417_p3  ;;  %s239_s19 = int_to_ptr.vmem [resolvable:$true] %s238_s19 }
  0x23   : > { %p1007_p5 = scmp.ge.s32.totalorder %s1301_s7, 1  ;;  %p243_p6 = scmp.lt.s32.totalorder %s1301_s7, 5 }
  0x24   : > { %s227_s9 = scalar_lea.sflag [#allocation4], %s226_s8  ;;  %p1155_p8 = pneg %p1459_p4 }
  0x25   : > { %s1166_s15 = scalar_lea.vmem %s239_s19, 1024  ;;  %s1303_s10 = smov [#allocation3]  }
  0x26   : > { %p1167_p9 = scmp.ne.s32.totalorder %s239_s19, %s1166_s15  ;;  %s1171_s17 = sshll.u32 %s1303_s10, 4  ;;  %s1172_s17 = int_to_ptr.vmem [resolvable:$false] %s1171_s17 }
  0x27   : > { %s1173_s6 = scalar_lea.vmem %s1172_s17, 2048  ;;  %p1174_p13 = scmp.lt.s32.totalorder %s239_s19, %s1172_s17 }
  0x28   : > { %p1169_p10 = pnand %p1167_p9, %p1155_p8  ;;  %p1175_p0 = scmp.lt.s32.totalorder %s1173_s6, %s1166_s15 }
  0x2a   : > { %p1170_p11 = pneg %p1169_p10  ;;  %p1176_p3 = por %p1175_p0, %p1174_p13 }
  0x2c   : > { %p1177_p1 = pnand %p1176_p3, %p1170_p11 }
  0x2e   : > { %1180 = shalt.err (!%p1177_p1)
}
  0x2f   : > { %1036 = dma.hbm_to_vmem [thread:$0]  (!%p1459_p4), %s236_s29, 1024, %s239_s19, %s227_s9  }
  0x30   : > { %p244_p2 = pnand %p1007_p5, %p243_p6 }
  0x31   : > { %s249_s13 = sand.u32 (!%p244_p2), 1, %s1277_s25  }
  0x32   : > { %247 = sbr.rel (%p244_p2) target bundleno = 471 (0x1d7), region = 44  ;;  %s1008_s8 = sshll.u32 (!%p244_p2), %s249_s13, 6 }
  0x33   : > { %s250_s14 = scalar_lea.sflag (!%p244_p2), [#allocation4], %s249_s13  ;;  %s1474_s18 = scalar_lea.vmem (!%p244_p2), [#allocation3], %s1008_s8 }
  0x37   : > { %1252 = dma.done.wait (%p1427_p7), %s250_s14, 1024  }
  0x38   : > { %1254 = vsyncadd (%p1427_p7), %s250_s14, 4294966272  ;;  %s279_s12 = sand.u32 1, %s1265_s22   ;;  %p1010_p2 = scmp.ne.s32.totalorder %s1285_s27, 0 }
  0x39   : > { %s1009_s29 = sshll.u32 %s279_s12, 6  ;;  %s1307_s16 = smov (!%p1010_p2), 1  }
  0x3a   : > { %s1483_s19 = scalar_lea.vmem [#allocation6], %s1009_s29  ;;  %286 = sbr.rel (%p1010_p2) target bundleno = 233 (0xe9), region = 52 }
  0x3b   : > { %s1308_s10 = smov (!%p1010_p2), 127  }
  0x3f   : > { %v344_v0 = vld [vmem:[%s1673_s1] sm:$0xff]  ;;  %v1304_v1 = vmov 2   ;;  %v1305_v2 = vmov 1   ;;  %v1306_v4 = vmov 0   ;;  %v1491_v5 = vld [vmem:[%s1474_s18 + $0x38] sm:$0xff]  ;;  %v288_v6 = vld [vmem:[%s1474_s18 + $0x8] sm:$0xff]  ;;  %v295_v19 = vlaneseq }
  0x40   : > { %1146 = vset.pattern.permute.xlu1 %v1304_v1  ;;  %1144 = vset.pattern.permute.xlu0 %v1305_v2  ;;  %v287_v3 = vld [vmem:[%s1474_s18] sm:$0xff]  ;;  %v289_v7 = vld [vmem:[%s1474_s18 + $0x10] sm:$0xff]  ;;  %v290_v8 = vld [vmem:[%s1474_s18 + $0x18] sm:$0xff] }
  0x41   : > { %428 = vperm.xlu1 %1146, %v344_v0   ;;  %367 = vperm.xlu0 %1144, %v344_v0   ;;  %v291_v9 = vld [vmem:[%s1474_s18 + $0x20] sm:$0xff]  ;;  %v292_v10 = vld [vmem:[%s1474_s18 + $0x28] sm:$0xff]  ;;  %v293_v11 = vld [vmem:[%s1474_s18 + $0x30] sm:$0xff]  ;;  %v1506_v22 = vand.u32 127, %v295_v19 }
  0x42   : > { %v447_v12 = vld [vmem:[%s1674_s2] sm:$0xff] }
  0x43   : > { %vm320_vm0 = vcmp.lt.s32.totalorder %v1506_v22, 1  ;;  %v303_v26 = vadd.s32 896, %v1506_v22  ;;  %vm402_vm1 = vcmp.lt.s32.totalorder %v1506_v22, 127 }
  0x45   : > { %1145 = vset.pattern.permute.xlu0 %v1306_v4  ;;  %304 = vrot.lane.b32.xlu1 %v287_v3, %s1307_s16  ;;  %vm418_vm2 = vcmp.ge.s32.totalorder %v303_v26, 1023 }
  0x46   : > { %347 = vperm.xlu0 %1145, %v344_v0  }
  0x49   : > { %318 = vrot.lane.b32.xlu1 %v1491_v5, %s1307_s16 }
  0x4a   : > { %306 = vrot.lane.b32.xlu0 %v288_v6, %s1307_s16 }
  0x4d   : > { %308 = vrot.lane.b32.xlu1 %v289_v7, %s1307_s16 }
  0x4e   : > { %310 = vrot.lane.b32.xlu0 %v290_v8, %s1307_s16 }
  0x51   : > { %312 = vrot.lane.b32.xlu1 %v291_v9, %s1307_s16 }
  0x52   : > { %314 = vrot.lane.b32.xlu0 %v292_v10, %s1307_s16 }
  0x55   : > { %316 = vrot.lane.b32.xlu1 %v293_v11, %s1307_s16 }
  0x56   : > { %386 = vrot.lane.b32.xlu0 %v287_v3, %s1308_s10 }
  0x59   : > { %400 = vrot.lane.b32.xlu1 %v1491_v5, %s1308_s10 }
  0x5a   : > { %388 = vrot.lane.b32.xlu0 %v288_v6, %s1308_s10 }
  0x5d   : > { %390 = vrot.lane.b32.xlu1 %v289_v7, %s1308_s10 }
  0x5e   : > { %392 = vrot.lane.b32.xlu0 %v290_v8, %s1308_s10 }
  0x61   : > { %394 = vrot.lane.b32.xlu1 %v291_v9, %s1308_s10 }
  0x62   : > { %396 = vrot.lane.b32.xlu0 %v292_v10, %s1308_s10 }
  0x65   : > { %398 = vrot.lane.b32.xlu1 %v293_v11, %s1308_s10 }
  0x66   : > { %450 = vperm.xlu0 %1145, %v447_v12  }
  0xbc   : > { %v1504_v13 = vpop.permute.xlu1 %428  ;;  %v368_v14 = vpop.permute.xlu0 %367 }
  0xbd   : > { %v370_v31 = vmul.f32 %v368_v14, %v287_v3  ;;  %v371_v33 = vmul.f32 %v368_v14, %v288_v6  ;;  %v372_v34 = vmul.f32 %v368_v14, %v289_v7  ;;  %v373_v37 = vmul.f32 %v368_v14, %v290_v8 }
  0xbe   : > { %v374_v38 = vmul.f32 %v368_v14, %v291_v9  ;;  %v375_v42 = vmul.f32 %v368_v14, %v292_v10  ;;  %v376_v55 = vmul.f32 %v368_v14, %v293_v11  ;;  %v377_v60 = vmul.f32 %v368_v14, %v1491_v5 }
  0xc0   : > { %v305_v15 = vpop.permute.xlu1 %304 }
  0xc1   : > { %v348_v16 = vpop.permute.xlu0 %347 }
  0xc4   : > { %v319_v17 = vpop.permute.xlu1 %318 }
  0xc5   : > { %v307_v18 = vpop.permute.xlu0 %306  ;;  %v328_v27 = vsel %vm320_vm0, %v319_v17, %v305_v15 }
  0xc6   : > { %v336_v29 = vsel %vm320_vm0, 0.0, %v328_v27  ;;  %v327_v32 = vsel %vm320_vm0, %v305_v15, %v307_v18 }
  0xc7   : > { %v350_v40 = vmul.f32 %v348_v16, %v336_v29  ;;  %v351_v44 = vmul.f32 %v348_v16, %v327_v32 }
  0xc8   : > { %v309_v20 = vpop.permute.xlu1 %308 }
  0xc9   : > { %v311_v21 = vpop.permute.xlu0 %310  ;;  %v326_v36 = vsel %vm320_vm0, %v307_v18, %v309_v20  ;;  %v378_v62 = vadd.f32 %v370_v31, %v350_v40  ;;  %v379_v3 = vadd.f32 %v371_v33, %v351_v44 }
  0xca   : > { %v325_v41 = vsel %vm320_vm0, %v309_v20, %v311_v21  ;;  %v352_v49 = vmul.f32 %v348_v16, %v326_v36 }
  0xcb   : > { %v353_v54 = vmul.f32 %v348_v16, %v325_v41 }
  0xcc   : > { %v313_v23 = vpop.permute.xlu1 %312  ;;  %v380_v4 = vadd.f32 %v372_v34, %v352_v49 }
  0xcd   : > { %v315_v24 = vpop.permute.xlu0 %314  ;;  %v324_v45 = vsel %vm320_vm0, %v311_v21, %v313_v23  ;;  %v381_v9 = vadd.f32 %v373_v37, %v353_v54 }
  0xce   : > { %v323_v46 = vsel %vm320_vm0, %v313_v23, %v315_v24  ;;  %v354_v58 = vmul.f32 %v348_v16, %v324_v45 }
  0xcf   : > { %v355_v59 = vmul.f32 %v348_v16, %v323_v46 }
  0xd0   : > { %v317_v25 = vpop.permute.xlu1 %316  ;;  %v382_v12 = vadd.f32 %v374_v38, %v354_v58 }
  0xd1   : > { %v387_v28 = vpop.permute.xlu0 %386  ;;  %v321_v43 = vsel %vm320_vm0, %v317_v25, %v319_v17  ;;  %v322_v47 = vsel %vm320_vm0, %v315_v24, %v317_v25  ;;  %v383_v14 = vadd.f32 %v375_v42, %v355_v59 }
  0xd2   : > { %v357_v56 = vmul.f32 %v348_v16, %v321_v43  ;;  %v356_v61 = vmul.f32 %v348_v16, %v322_v47 }
  0xd4   : > { %v401_v30 = vpop.permute.xlu1 %400  ;;  %v385_v10 = vadd.f32 %v377_v60, %v357_v56  ;;  %v384_v15 = vadd.f32 %v376_v55, %v356_v61 }
  0xd5   : > { %v389_v35 = vpop.permute.xlu0 %388  ;;  %v410_v39 = vsel %vm402_vm1, %v401_v30, %v387_v28 }
  0xd6   : > { %v426_v50 = vsel %vm418_vm2, 0.0, %v410_v39  ;;  %v409_v51 = vsel %vm402_vm1, %v387_v28, %v389_v35 }
  0xd7   : > { %v438_v63 = vmul.f32 %v1504_v13, %v426_v50  ;;  %v431_v0 = vmul.f32 %v1504_v13, %v409_v51 }
  0xd8   : > { %v391_v48 = vpop.permute.xlu1 %390 }
  0xd9   : > { %v408_v52 = vsel %vm402_vm1, %v389_v35, %v391_v48  ;;  %v393_v53 = vpop.permute.xlu0 %392  ;;  %v446_v17 = vadd.f32 %v438_v63, %v385_v10  ;;  %v439_v18 = vadd.f32 %v431_v0, %v378_v62 }
  0xda   : > { %v407_v57 = vsel %vm402_vm1, %v391_v48, %v393_v53  ;;  %v432_v1 = vmul.f32 %v1504_v13, %v408_v52 }
  0xdb   : > { %v433_v6 = vmul.f32 %v1504_v13, %v407_v57 }
  0xdc   : > { %v395_v2 = vpop.permute.xlu1 %394  ;;  %v440_v19 = vadd.f32 %v432_v1, %v379_v3 }
  0xdd   : > { %v406_v7 = vsel %vm402_vm1, %v393_v53, %v395_v2  ;;  %v397_v8 = vpop.permute.xlu0 %396  ;;  %v441_v23 = vadd.f32 %v433_v6, %v380_v4 }
  0xde   : > { %v434_v5 = vmul.f32 %v1504_v13, %v406_v7  ;;  %v405_v11 = vsel %vm402_vm1, %v395_v2, %v397_v8 }
  0xdf   : > { %v435_v16 = vmul.f32 %v1504_v13, %v405_v11 }
  0xe0   : > { %v442_v20 = vadd.f32 %v434_v5, %v381_v9  ;;  %v399_v21 = vpop.permute.xlu1 %398 }
  0xe1   : > { %v443_v24 = vadd.f32 %v435_v16, %v382_v12  ;;  %v403_v25 = vsel %vm402_vm1, %v399_v21, %v401_v30  ;;  %v404_v26 = vsel %vm402_vm1, %v397_v8, %v399_v21  ;;  %v451_v27 = vpop.permute.xlu0 %450 }
  0xe2   : > { %v436_v28 = vmul.f32 %v1504_v13, %v404_v26  ;;  %v437_v29 = vmul.f32 %v1504_v13, %v403_v25  ;;  %v453_v31 = vadd.f32 %v451_v27, %v439_v18  ;;  %v454_v32 = vadd.f32 %v451_v27, %v440_v19 }
  0xe3   : > { %v455_v33 = vadd.f32 %v451_v27, %v441_v23  ;;  %v456_v34 = vadd.f32 %v451_v27, %v442_v20  ;;  %v457_v35 = vadd.f32 %v451_v27, %v443_v24  ;;  %v460_v36 = vadd.f32 %v451_v27, %v446_v17 }
  0xe4   : > { %v444_v37 = vadd.f32 %v436_v28, %v383_v14  ;;  %v445_v38 = vadd.f32 %v437_v29, %v384_v15  ;;  %461 = vst [vmem:[#allocation2] sm:$0xff] %v453_v31  ;;  %462 = vst [vmem:[#allocation2 + $0x8] sm:$0xff] %v454_v32 }
  0xe5   : > { %463 = vst [vmem:[#allocation2 + $0x10] sm:$0xff] %v455_v33  ;;  %464 = vst [vmem:[#allocation2 + $0x18] sm:$0xff] %v456_v34 }
  0xe6   : > { %465 = vst [vmem:[#allocation2 + $0x20] sm:$0xff] %v457_v35  ;;  %468 = vst [vmem:[#allocation2 + $0x38] sm:$0xff] %v460_v36  ;;  %v458_v22 = vadd.f32 %v451_v27, %v444_v37  ;;  %v459_v30 = vadd.f32 %v451_v27, %v445_v38 }
  0xe8   : > { %466 = vst [vmem:[#allocation2 + $0x28] sm:$0xff] %v458_v22  ;;  %467 = vst [vmem:[#allocation2 + $0x30] sm:$0xff] %v459_v30 }
  0xe9 PF: > { %s1011_s13 = sshll.u32 %s1285_s27, 9  ;;  %v1309_v13 = vmov 0.0   ;;  %v486_v39 = vld [vmem:[%s1677_s5] sm:$0xff]  ;;  %v1310_v40 = vmov 1   ;;  %v1311_v41 = vmov 0   ;;  %vm498_vm3 = vcmask 64512  }
  0xea   : > { %s470_s8 = sshra.s32 %s1011_s13, 7  ;;  %569 = vmatprep.mubr.f32.mxu0 %v1309_v13  ;;  %646 = vmatprep.mubr.f32.mxu1 %v1309_v13  ;;  %v484_v42 = vld [vmem:[%s1675_s3] sm:$0xff]  ;;  %v485_v51 = vld [vmem:[%s1675_s3 + $0x8] sm:$0xff]  ;;  %v1312_v55 = vmov 2   ;;  %v1313_v56 = vmov 3   ;;  %s1023_s16 = sshll.u32 %s1285_s27, 2 }
  0xeb   : > { %s1012_s9 = sshll.u32 %s470_s8, 3  ;;  %1148 = vset.pattern.permute.xlu1 %v1310_v40  ;;  %1147 = vset.pattern.permute.xlu0 %v1311_v41  ;;  %v487_v52 = vld [vmem:[%s1677_s5 + $0x8] sm:$0xff]  ;;  %v699_v53 = vld [vmem:[%s1676_s4] sm:$0xff]  ;;  %s1696_s8 = sld [smem:[#allocation13_spill]] }
  0xec   : > { %s479_s10 = scalar_lea.vmem %s1474_s18, %s1012_s9 [#allocation3]  ;;  %668 = vperm.xlu1 %1148, %v486_v39   ;;  %490 = vperm.xlu0 %1147, %v486_v39   ;;  %s473_s17 = scalar_lea.vmem [#allocation2], %s1012_s9  ;;  %v700_v54 = vld [vmem:[%s1676_s4 + $0x8] sm:$0xff] }
  0xed   : > { %v481_v47 = vld [vmem:[%s479_s10 + $0x8] sm:$0xff]  ;;  %v483_v48 = vld [vmem:[%s479_s10 + $0x18] sm:$0xff]  ;;  %v480_v49 = vld [vmem:[%s479_s10] sm:$0xff]  ;;  %s1612_s29 = scalar_lea.sflag [#allocation5], %s279_s12  ;;  %s1314_s15 = smov [#allocation6]  }
  0xee   : > { %v482_v50 = vld [vmem:[%s479_s10 + $0x10] sm:$0xff]  ;;  %s1024_s10 = sshll.u32 %s1289_s28, 4  ;;  %s909_s28 = sshll.u32 %s1483_s19, 4  ;;  %s1604_s28 = int_to_ptr.vmem [resolvable:$true] %s909_s28 }
  0xef   : > { %v475_v43 = vld [vmem:[%s473_s17 + $0x8] sm:$0xff]  ;;  %v477_v44 = vld [vmem:[%s473_s17 + $0x18] sm:$0xff]  ;;  %v474_v45 = vld [vmem:[%s473_s17] sm:$0xff]  ;;  %s1181_s9 = scalar_lea.vmem %s1604_s28, 1024 }
  0xf0   : > { %535 = vmatprep.subr.mxu0 %v475_v43  ;;  %612 = vmatprep.subr.mxu1 %v477_v44  ;;  %v476_v46 = vld [vmem:[%s473_s17 + $0x10] sm:$0xff]  ;;  %s1587_s17 = sadd.s32 %s1024_s10, %s1023_s16  ;;  %p1182_p7 = scmp.ne.s32.totalorder %s1604_s28, %s1181_s9 }
  0xf1   : > { %536 = vmatpush1.msra.mxu0 %v474_v45  ;;  %613 = vmatpush1.msra.mxu1 %v476_v46  ;;  %s1025_s27 = sshll.u32 %s1587_s17, 7  ;;  %s1185_s16 = sshll.u32 %s1314_s15, 4  ;;  %s1186_s16 = int_to_ptr.vmem [resolvable:$false] %s1185_s16 }
  0xf2   : > { %1014 = vmatmul.mubr.msk.f32.vlgmr.msra.gmra.mxu0 %vm498_vm3, %v484_v42  ;;  %1016 = vmatmul.mubr.msk.f32.vlgmr.msra.gmra.mxu1 %vm498_vm3, %v484_v42  ;;  %s1600_s14 = scalar_lea.hbm %s1696_s8, %s1025_s27  ;;  %p1183_p4 = pnand %p1182_p7, %p1435_p12 }
  0xf3   : > { %745 = vmatprep.subr.mxu0 %v481_v47  ;;  %822 = vmatprep.subr.mxu1 %v483_v48  ;;  %s1187_s10 = scalar_lea.vmem %s1186_s16, 2048  ;;  %p1188_p6 = scmp.lt.s32.totalorder %s1604_s28, %s1186_s16 }
  0xf4   : > { %746 = vmatpush1.msra.mxu0 %v480_v49  ;;  %823 = vmatpush1.msra.mxu1 %v482_v50  ;;  %p1184_p5 = pneg %p1183_p4  ;;  %p1189_p8 = scmp.lt.s32.totalorder %s1187_s10, %s1181_s9 }
  0xf5   : > { %575 = vmatprep.mubr.f32.mxu0 %v1309_v13  ;;  %652 = vmatprep.mubr.f32.mxu1 %v1309_v13 }
  0xf6   : > { %1015 = vmatmul.mubr.msk.f32.gmra.mxu0 %vm498_vm3, %v485_v51  ;;  %1017 = vmatmul.mubr.msk.f32.gmra.mxu1 %vm498_vm3, %v485_v51  ;;  %p1190_p9 = por %p1189_p8, %p1188_p6 }
  0xf7   : > { %779 = vmatprep.mubr.f32.mxu0 %v1309_v13  ;;  %856 = vmatprep.mubr.f32.mxu1 %v1309_v13 }
  0xf8   : > { %672 = vperm.xlu1 %1148, %v487_v52   ;;  %495 = vperm.xlu0 %1147, %v487_v52   ;;  %p1191_p10 = pnand %p1190_p9, %p1184_p5 }
  0xfa   : > { %1018 = vmatmul.mubr.msk.f32.vlgmr.msra.gmra.mxu0 %vm498_vm3, %v699_v53  ;;  %1020 = vmatmul.mubr.msk.f32.vlgmr.msra.gmra.mxu1 %vm498_vm3, %v699_v53 }
  0xfb   : > { %785 = vmatprep.mubr.f32.mxu0 %v1309_v13  ;;  %862 = vmatprep.mubr.f32.mxu1 %v1309_v13 }
  0xfc   : > { %1150 = vset.pattern.permute.xlu1 %v1312_v55  ;;  %1149 = vset.pattern.permute.xlu0 %v1312_v55 }
  0xfd   : > { %688 = vperm.xlu1 %1150, %v487_v52   ;;  %684 = vperm.xlu0 %1149, %v486_v39  }
  0xfe   : > { %1019 = vmatmul.mubr.msk.f32.gmra.mxu0 %vm498_vm3, %v700_v54  ;;  %1021 = vmatmul.mubr.msk.f32.gmra.mxu1 %vm498_vm3, %v700_v54 }
 0x101   : > { %1151 = vset.pattern.permute.xlu1 %v1313_v56  ;;  %1152 = vset.pattern.permute.xlu0 %v1313_v56 }
 0x102   : > { %702 = vperm.xlu1 %1151, %v486_v39   ;;  %706 = vperm.xlu0 %1152, %v487_v52  }
 0x167   : > { %v669_v57 = vpop.permute.xlu1 %668  ;;  %v491_v59 = vpop.permute.xlu0 %490 }
 0x173   : > { %v673_v58 = vpop.permute.xlu1 %672  ;;  %v496_v1 = vpop.permute.xlu0 %495 }
 0x178   : > { %v1583_v60 = vpop.permute.xlu1 %688  ;;  %v685_v15 = vpop.permute.xlu0 %684 }
 0x17d   : > { %v703_v16 = vpop.permute.xlu1 %702  ;;  %v707_v37 = vpop.permute.xlu0 %706 }
 0x1b2   : > { %v571_v61 = vpop.f32.mrf.mxu0  ;;  %v648_v62 = vpop.f32.mrf.mxu1 }
 0x1b3   : > { %v572_v63 = vadd.f32 %v571_v61, %v491_v59  ;;  %v649_v0 = vadd.f32 %v648_v62, %v491_v59 }
 0x1b4   : > { %v573_v2 = vpop.f32.mrf.mxu0  ;;  %v650_v3 = vpop.f32.mrf.mxu1 }
 0x1b5   : > { %v659_v4 = vmax.f32 %v572_v63, 0.0  ;;  %v661_v6 = vmax.f32 %v649_v0, 0.0  ;;  %v574_v7 = vadd.f32 %v573_v2, %v491_v59  ;;  %v651_v8 = vadd.f32 %v650_v3, %v491_v59 }
 0x1b6   : > { %v577_v9 = vpop.f32.mrf.mxu0  ;;  %v654_v10 = vpop.f32.mrf.mxu1 }
 0x1b7   : > { %v675_v5 = vmul.f32 %v669_v57, %v659_v4  ;;  %v677_v11 = vmul.f32 %v669_v57, %v661_v6  ;;  %v660_v12 = vmax.f32 %v574_v7, 0.0  ;;  %v662_v14 = vmax.f32 %v651_v8, 0.0 }
 0x1b8   : > { %v578_v17 = vadd.f32 %v577_v9, %v496_v1  ;;  %v655_v18 = vadd.f32 %v654_v10, %v496_v1  ;;  %v579_v19 = vpop.f32.mrf.mxu0  ;;  %v656_v20 = vpop.f32.mrf.mxu1 }
 0x1b9   : > { %v676_v21 = vmul.f32 %v669_v57, %v660_v12  ;;  %v678_v23 = vmul.f32 %v669_v57, %v662_v14  ;;  %v580_v24 = vadd.f32 %v579_v19, %v496_v1  ;;  %v657_v25 = vadd.f32 %v656_v20, %v496_v1 }
 0x1ba   : > { %v663_v26 = vmax.f32 %v578_v17, 0.0  ;;  %v665_v27 = vmax.f32 %v655_v18, 0.0  ;;  %v691_v28 = vadd.f32 %v685_v15, %v675_v5  ;;  %v781_v29 = vpop.f32.mrf.mxu0  ;;  %v693_v31 = vadd.f32 %v685_v15, %v677_v11  ;;  %v858_v32 = vpop.f32.mrf.mxu1 }
 0x1bb   : > { %v664_v33 = vmax.f32 %v580_v24, 0.0  ;;  %v666_v34 = vmax.f32 %v657_v25, 0.0  ;;  %v782_v35 = vadd.f32 %v781_v29, %v703_v16  ;;  %v859_v36 = vadd.f32 %v858_v32, %v703_v16 }
 0x1bc   : > { %v679_v38 = vmul.f32 %v673_v58, %v663_v26  ;;  %v681_v22 = vmul.f32 %v673_v58, %v665_v27  ;;  %v692_v30 = vadd.f32 %v685_v15, %v676_v21  ;;  %v783_v13 = vpop.f32.mrf.mxu0  ;;  %v694_v39 = vadd.f32 %v685_v15, %v678_v23  ;;  %v860_v40 = vpop.f32.mrf.mxu1 }
 0x1bd   : > { %v680_v41 = vmul.f32 %v673_v58, %v664_v33  ;;  %v682_v42 = vmul.f32 %v673_v58, %v666_v34  ;;  %v869_v43 = vadd.f32 %v782_v35, %v691_v28  ;;  %v871_v44 = vadd.f32 %v859_v36, %v693_v31 }
 0x1be   : > { %v784_v45 = vadd.f32 %v783_v13, %v703_v16  ;;  %v861_v46 = vadd.f32 %v860_v40, %v703_v16  ;;  %v695_v47 = vadd.f32 %v1583_v60, %v679_v38  ;;  %v787_v48 = vpop.f32.mrf.mxu0  ;;  %v697_v49 = vadd.f32 %v1583_v60, %v681_v22  ;;  %v864_v50 = vpop.f32.mrf.mxu1 }
 0x1bf   : > { %v877_v51 = vmax.f32 %v869_v43, 0.0  ;;  %v879_v52 = vmax.f32 %v871_v44, 0.0  ;;  %v788_v53 = vadd.f32 %v787_v48, %v707_v37  ;;  %v865_v54 = vadd.f32 %v864_v50, %v707_v37 }
 0x1c0   : > { %v870_v55 = vadd.f32 %v784_v45, %v692_v30  ;;  %v872_v56 = vadd.f32 %v861_v46, %v694_v39  ;;  %v696_v57 = vadd.f32 %v1583_v60, %v680_v41  ;;  %v789_v58 = vpop.f32.mrf.mxu0  ;;  %v698_v59 = vadd.f32 %v1583_v60, %v682_v42  ;;  %v866_v61 = vpop.f32.mrf.mxu1 }
 0x1c1   : > { %885 = vst [vmem:[%s1483_s19] sm:$0xff] %v877_v51  ;;  %887 = vst [vmem:[%s1483_s19 + $0x10] sm:$0xff] %v879_v52  ;;  %v873_v62 = vadd.f32 %v788_v53, %v695_v47  ;;  %v875_v63 = vadd.f32 %v865_v54, %v697_v49  ;;  %v790_v0 = vadd.f32 %v789_v58, %v707_v37 }
 0x1c2   : > { %v867_v1 = vadd.f32 %v866_v61, %v707_v37  ;;  %v878_v2 = vmax.f32 %v870_v55, 0.0  ;;  %v880_v3 = vmax.f32 %v872_v56, 0.0 }
 0x1c3   : > { %v881_v4 = vmax.f32 %v873_v62, 0.0  ;;  %v883_v60 = vmax.f32 %v875_v63, 0.0  ;;  %v874_v6 = vadd.f32 %v790_v0, %v696_v57 }
 0x1c4   : > { %v876_v7 = vadd.f32 %v867_v1, %v698_v59  ;;  %886 = vst [vmem:[%s1483_s19 + $0x8] sm:$0xff] %v878_v2  ;;  %888 = vst [vmem:[%s1483_s19 + $0x18] sm:$0xff] %v880_v3 }
 0x1c5   : > { %889 = vst [vmem:[%s1483_s19 + $0x20] sm:$0xff] %v881_v4  ;;  %891 = vst [vmem:[%s1483_s19 + $0x30] sm:$0xff] %v883_v60  ;;  %v882_v8 = vmax.f32 %v874_v6, 0.0 }
 0x1c6   : > { %v884_v9 = vmax.f32 %v876_v7, 0.0 }
 0x1c7   : > { %890 = vst [vmem:[%s1483_s19 + $0x28] sm:$0xff] %v882_v8 }
 0x1c8   : > { %892 = vst [vmem:[%s1483_s19 + $0x38] sm:$0xff] %v884_v9 }
 0x1c9   : > { %1194 = shalt.err (!%p1191_p10)
}
 0x1ca   : > { %s1195_s12 = scalar_lea.hbm %s1600_s14, 1024  ;;  %s1199_s27 = scalar_lea.hbm %s1696_s8, 4096 }
 0x1cb   : > { %p1196_p11 = scmp.ne.s32.totalorder %s1600_s14, %s1195_s12  ;;  %p1200_p3 = scmp.lt.s32.totalorder %s1600_s14, %s1696_s8 }
 0x1cc   : > { %p1201_p1 = scmp.lt.s32.totalorder %s1199_s27, %s1195_s12 }
 0x1cd   : > { %p1197_p13 = pnand %p1196_p11, %p1435_p12 }
 0x1ce   : > { %p1202_p2 = por %p1201_p1, %p1200_p3 }
 0x1cf   : > { %p1198_p0 = pneg %p1197_p13 }
 0x1d1   : > { %p1203_p7 = pnand %p1202_p2, %p1198_p0 }
 0x1d3   : > { %1206 = shalt.err (!%p1203_p7)
}
 0x1d4   : > { %s1315_s9 = smov 512   ;;  %s1316_s15 = smov 1024  }
 0x1d5   : > { %s1317_s16 = smov 32  }
 0x1d6   : > { %1031 = dma.vmem_to_hbm [thread:$0]  (%p1435_p12), %s1604_s28, 1024, %s1600_s14, %s1612_s29, %s1315_s9, %s1316_s15, %s1317_s16  }
 0x1d7 PF: > { %p1042_p4 = scmp.ge.s32.totalorder %s1301_s7, 2  ;;  %s924_s10 = sand.u32 1, %s1261_s21  }
 0x1d8   : > { %p1697_p5 = scmp.ne.s32.totalorder %s1693_s11, 0  ;;  %s925_s12 = scalar_lea.sflag [#allocation5], %s924_s10 }
 0x1da   : > { %p1038_p6 = pnand %p1042_p4, %p1697_p5 }
 0x1dc   : > { %p1039_p8 = pneg %p1038_p6 }
 0x1de   : > { %1256 = dma.done.wait (%p1039_p8), %s925_s12, 1024  }
 0x1df   : > { %1258 = vsyncadd (%p1039_p8), %s925_s12, 4294966272  ;;  %s22_s7 = sadd.s32 1, %s1301_s7   ;;  %s1698_s27 = sld [smem:[#allocation9_spill]] }
 0x1e0   : > { %p19_p9 = scmp.ge.s32.totalorder %s22_s7, 6   ;;  %s1699_s29 = sld [smem:[#allocation10_spill]] }
 0x1e1   : > { %s1700_s18 = sld [smem:[#allocation11_spill]]  ;;  %s1701_s21 = smov %s1265_s22 }
 0x1e2   : > { %s1702_s22 = smov %s1269_s23  ;;  %s1703_s23 = smov %s1443_s24 }
 0x1e3   : > { %s1704_s24 = smov %s1277_s25  ;;  %s1705_s25 = smov %s1281_s26 }
 0x1e4   : > { %s1706_s26 = smov %s1440_s20  ;;  %s1707_s28 = smov %s1297_s30 }
 0x1e5   :  { %21 = sbr.rel (!%p19_p9) target bundleno = 11 (0xb), region = 95 }
 0x1e7   : > { %s1708_s30 = smov %s1700_s18 }
 0x1ea   :  { %930 = vsyncpa [#allocation4], 1 }
 0x1eb   :  { %932 = vsyncpa [#allocation4 + $0x1], 1 }
 0x1ec   :  { %933 = vsyncpa [#allocation5], 1 }
 0x1ed   :  { %935 = vsyncpa [#allocation5 + $0x1], 1 }

</bundles_post_ra>
